<compile_context>
chip_gen: v5e
topology: v5e:2x2
jax: 0.10.0
libtpu: 0.0.40
codegen_flags: <defaults>
</compile_context>

<pallas_src>
import jax
import jax.numpy as jnp
from jax import lax
from jax.experimental import pallas as pl
from jax.experimental.pallas import tpu as pltpu


def _round_up(a, b):
    return ((a + b - 1) // b) * b


def _ff_kernel_packed(x_ref, params_ref, w1_ref, w2_ref, avg_ref, o_ref):
    """Lane-packed path (D < 128): LayerNorm stats via block-averaging matmul."""
    x = x_ref[...].astype(jnp.float32)

    # --- LayerNorm (norm2), eps = 1e-5 (torch default), per D-lane segment ---
    avg = avg_ref[...]                               # block-diag 1/D averaging
    mean = jnp.dot(x, avg, preferred_element_type=jnp.float32,
                   precision=lax.Precision.HIGHEST)
    xc = x - mean
    var = jnp.dot(xc * xc, avg, preferred_element_type=jnp.float32,
                  precision=lax.Precision.HIGHEST)

    gamma = params_ref[0:1, :].astype(jnp.float32)
    beta = params_ref[1:2, :].astype(jnp.float32)
    b1 = params_ref[2:3, :].astype(jnp.float32)
    b2 = params_ref[3:4, :].astype(jnp.float32)

    y = xc * lax.rsqrt(var + 1e-5) * gamma + beta

    # --- FF: Linear -> ReLU -> Linear on the MXU (block-diagonal weights) ---
    cdt = w1_ref.dtype
    h = jnp.dot(y.astype(cdt), w1_ref[...], preferred_element_type=jnp.float32) + b1
    h = jnp.maximum(h, 0.0)
    f = jnp.dot(h.astype(cdt), w2_ref[...], preferred_element_type=jnp.float32) + b2

    # --- residual add (dropout is identity in eval mode) ---
    o_ref[...] = (x + f).astype(o_ref.dtype)


def _ff_kernel_plain(x_ref, params_ref, w1_ref, w2_ref, o_ref):
    """Unpacked path (D >= 128 or not packable): lane reductions for LN."""
    x = x_ref[...].astype(jnp.float32)

    mean = jnp.mean(x, axis=-1, keepdims=True)
    xc = x - mean
    var = jnp.mean(xc * xc, axis=-1, keepdims=True)

    gamma = params_ref[0:1, :].astype(jnp.float32)
    beta = params_ref[1:2, :].astype(jnp.float32)
    b1 = params_ref[2:3, :].astype(jnp.float32)
    b2 = params_ref[3:4, :].astype(jnp.float32)

    y = xc * lax.rsqrt(var + 1e-5) * gamma + beta

    cdt = w1_ref.dtype
    h = jnp.dot(y.astype(cdt), w1_ref[...], preferred_element_type=jnp.float32) + b1
    h = jnp.maximum(h, 0.0)
    f = jnp.dot(h.astype(cdt), w2_ref[...], preferred_element_type=jnp.float32) + b2

    o_ref[...] = (x + f).astype(o_ref.dtype)


def ff_forward(x, gamma, beta, w1, b1, w2, b2, *, tm=512):
    """x: (B, S, D) with D = h_dim // 2.  Linear weights stored (in, out)."""
    B, S, D = x.shape
    M = B * S
    dt = x.dtype

    # --- lane packing: fold rows so the lane axis is 128-wide when D < 128 ---
    pack = 1
    if D < 128 and 128 % D == 0 and M % (128 // D) == 0:
        pack = 128 // D
    Dp = D * pack
    Mp = M // pack
    x2 = x.reshape(Mp, Dp)

    # --- row tiling: large tiles, sublane-aligned, zero-padded tail ---------
    tm_eff = max(8, min(tm, _round_up(Mp, 8)))
    # Keep >= 2 grid steps when there is enough work so both TensorCores
    # (v7x megacore) get rows via the "parallel" grid axis.
    if Mp >= 2 * 256:
        tm_eff = min(tm_eff, _round_up(-(-Mp // 2), 256))
    Mpad = _round_up(Mp, tm_eff)
    if Mpad != Mp:
        x2 = jnp.pad(x2, ((0, Mpad - Mp), (0, 0)))

    # --- parameters: one (4, Dp) slab = [gamma; beta; b1; b2] (tiled) --------
    def _tile_vec(v):
        return jnp.tile(jnp.asarray(v, jnp.float32).reshape(1, D), (1, pack))

    params = jnp.concatenate(
        [_tile_vec(gamma), _tile_vec(beta), _tile_vec(b1), _tile_vec(b2)], axis=0)

    x_spec = pl.BlockSpec((tm_eff, Dp), lambda i: (i, 0))
    p_spec = pl.BlockSpec((4, Dp), lambda i: (0, 0))
    w_spec = pl.BlockSpec((Dp, Dp), lambda i: (0, 0))

    if pack > 1:
        eye = jnp.eye(pack, dtype=w1.dtype)
        w1p = jnp.kron(eye, jnp.asarray(w1))           # block-diagonal (Dp, Dp)
        w2p = jnp.kron(eye, jnp.asarray(w2))
        avg = jnp.kron(jnp.eye(pack, dtype=jnp.float32),
                       jnp.full((D, D), 1.0 / D, jnp.float32))
        kernel = _ff_kernel_packed
        operands = (x2, params, w1p, w2p, avg)
        in_specs = [x_spec, p_spec, w_spec, w_spec, w_spec]
    else:
        kernel = _ff_kernel_plain
        operands = (x2, params, jnp.asarray(w1), jnp.asarray(w2))
        in_specs = [x_spec, p_spec, w_spec, w_spec]

    out = pl.pallas_call(
        kernel,
        out_shape=jax.ShapeDtypeStruct((Mpad, Dp), dt),
        grid_spec=pltpu.PrefetchScalarGridSpec(
            num_scalar_prefetch=0,
            grid=(Mpad // tm_eff,),
            in_specs=in_specs,
            out_specs=pl.BlockSpec((tm_eff, Dp), lambda i: (i, 0)),
        ),
        compiler_params=pltpu.CompilerParams(
            dimension_semantics=("parallel",),
            vmem_limit_bytes=64 * 1024 * 1024),
    )(*operands)

    return out[:Mp].reshape(B, S, D)


def ff_reference(x, gamma, beta, w1, b1, w2, b2):
    mean = jnp.mean(x, axis=-1, keepdims=True)
    var = jnp.mean((x - mean) ** 2, axis=-1, keepdims=True)
    y = (x - mean) / jnp.sqrt(var + 1e-5) * gamma + beta
    h = jnp.maximum(y @ w1 + b1, 0.0)
    f = h @ w2 + b2
    return x + f


if __name__ == "__main__":
    # Use full-precision matmuls everywhere (kernel + reference) so the
    # numerical comparison is meaningful.
    jax.config.update("jax_default_matmul_precision", "highest")

    # Module config: h_dim = 64 -> working dim D = h_dim // 2 = 32
    h_dim = 64
    D = h_dim // 2
    B, S = 2, 8

    key = jax.random.PRNGKey(0)
    kx, kw1, kb1, kw2, kb2 = jax.random.split(key, 5)

    x = jax.random.normal(kx, (B, S, D), dtype=jnp.float32)

    # Deterministic parameter init (torch.nn.Linear-like uniform bounds).
    bound = 1.0 / (D ** 0.5)
    gamma = jnp.ones((1, D), dtype=jnp.float32)   # LayerNorm (norm2) weight
    beta = jnp.zeros((1, D), dtype=jnp.float32)   # LayerNorm (norm2) bias
    # Linear weights stored (in, out) so the kernel does y @ w (== torch x @ W.T).
    w1 = jax.random.uniform(kw1, (D, D), jnp.float32, -bound, bound)
    b1 = jax.random.uniform(kb1, (1, D), jnp.float32, -bound, bound)
    w2 = jax.random.uniform(kw2, (D, D), jnp.float32, -bound, bound)
    b2 = jax.random.uniform(kb2, (1, D), jnp.float32, -bound, bound)

    out = ff_forward(x, gamma, beta, w1, b1, w2, b2)
    out = jax.block_until_ready(out)

    ref = ff_reference(x, gamma, beta, w1, b1, w2, b2)
    assert out.shape == x.shape
    assert jnp.allclose(out, ref, atol=1e-4, rtol=1e-4), "mismatch vs reference"

    # TODO(synk): dropout(p=0.1) is identity here (eval semantics); training-mode
    # dropout would need pltpu.prng_seed/prng_random_bits inside the kernel.
    print("KERNEL_OK")
</pallas_src>

<mosaic_0001>
module attributes {stable_mosaic.version = 11 : i64} {
  func.func @_ff_kernel_packed(%arg0: i32, %arg1: memref<8x128xf32, #tpu.memory_space<vmem>>, %arg2: memref<4x128xf32, #tpu.memory_space<vmem>>, %arg3: memref<128x128xf32, #tpu.memory_space<vmem>>, %arg4: memref<128x128xf32, #tpu.memory_space<vmem>>, %arg5: memref<128x128xf32, #tpu.memory_space<vmem>>, %arg6: memref<8x128xf32, #tpu.memory_space<vmem>>) attributes {dimension_semantics = [#tpu.dimension_semantics<parallel>], iteration_bounds = array<i64: 1>, scalar_prefetch = 0 : i64, scratch_operands = 0 : i64, tpu.core_type = #tpu.core_type<tc>, window_params = [{transform_indices = @transform_0, window_bounds = array<i64: 8, 128>}, {pipeline_mode = #tpu.pipeline_mode<synchronous>, transform_indices = @transform_1, window_bounds = array<i64: 4, 128>}, {pipeline_mode = #tpu.pipeline_mode<synchronous>, transform_indices = @transform_2, window_bounds = array<i64: 128, 128>}, {pipeline_mode = #tpu.pipeline_mode<synchronous>, transform_indices = @transform_3, window_bounds = array<i64: 128, 128>}, {pipeline_mode = #tpu.pipeline_mode<synchronous>, transform_indices = @transform_4, window_bounds = array<i64: 128, 128>}, {transform_indices = @transform_5, window_bounds = array<i64: 8, 128>}]} {
    %c0 = arith.constant 0 : index
    %c0_0 = arith.constant 0 : index
    %0 = vector.load %arg1[%c0, %c0_0] : memref<8x128xf32, #tpu.memory_space<vmem>>, vector<8x128xf32>
    %c0_1 = arith.constant 0 : index
    %c0_2 = arith.constant 0 : index
    %1 = vector.load %arg5[%c0_1, %c0_2] : memref<128x128xf32, #tpu.memory_space<vmem>>, vector<128x128xf32>
    %cst = arith.constant dense<0.000000e+00> : vector<8x128xf32>
    %2 = tpu.matmul %0, %1, %cst {dimension_numbers = #tpu.dot_dimension_numbers<[1], [0], [0], [1], [0, 0, 1, 1], [], []>, precision = #tpu.contract_precision<fp32>} : vector<8x128xf32>, vector<128x128xf32>, vector<8x128xf32> -> vector<8x128xf32>
    %3 = arith.subf %0, %2 : vector<8x128xf32>
    %4 = arith.mulf %3, %3 : vector<8x128xf32>
    %cst_3 = arith.constant dense<0.000000e+00> : vector<8x128xf32>
    %5 = tpu.matmul %4, %1, %cst_3 {dimension_numbers = #tpu.dot_dimension_numbers<[1], [0], [0], [1], [0, 0, 1, 1], [], []>, precision = #tpu.contract_precision<fp32>} : vector<8x128xf32>, vector<128x128xf32>, vector<8x128xf32> -> vector<8x128xf32>
    %c0_4 = arith.constant 0 : index
    %c0_5 = arith.constant 0 : index
    %6 = vector.load %arg2[%c0_4, %c0_5] : memref<4x128xf32, #tpu.memory_space<vmem>>, vector<1x128xf32>
    %c1 = arith.constant 1 : index
    %c0_6 = arith.constant 0 : index
    %7 = vector.load %arg2[%c1, %c0_6] : memref<4x128xf32, #tpu.memory_space<vmem>>, vector<1x128xf32>
    %c2 = arith.constant 2 : index
    %c0_7 = arith.constant 0 : index
    %8 = vector.load %arg2[%c2, %c0_7] : memref<4x128xf32, #tpu.memory_space<vmem>>, vector<1x128xf32>
    %c3 = arith.constant 3 : index
    %c0_8 = arith.constant 0 : index
    %9 = vector.load %arg2[%c3, %c0_8] : memref<4x128xf32, #tpu.memory_space<vmem>>, vector<1x128xf32>
    %cst_9 = arith.constant 9.99999974E-6 : f32
    %10 = vector.broadcast %cst_9 : f32 to vector<8x128xf32>
    %11 = arith.addf %5, %10 : vector<8x128xf32>
    %12 = math.rsqrt %11 : vector<8x128xf32>
    %13 = arith.mulf %3, %12 : vector<8x128xf32>
    %14 = vector.broadcast %6 : vector<1x128xf32> to vector<8x128xf32>
    %15 = arith.mulf %13, %14 : vector<8x128xf32>
    %16 = vector.broadcast %7 : vector<1x128xf32> to vector<8x128xf32>
    %17 = arith.addf %15, %16 : vector<8x128xf32>
    %c0_10 = arith.constant 0 : index
    %c0_11 = arith.constant 0 : index
    %18 = vector.load %arg3[%c0_10, %c0_11] : memref<128x128xf32, #tpu.memory_space<vmem>>, vector<128x128xf32>
    %cst_12 = arith.constant dense<0.000000e+00> : vector<8x128xf32>
    %19 = tpu.matmul %17, %18, %cst_12 {dimension_numbers = #tpu.dot_dimension_numbers<[1], [0], [0], [1], [0, 0, 1, 1], [], []>, precision = #tpu.contract_precision<fp32>} : vector<8x128xf32>, vector<128x128xf32>, vector<8x128xf32> -> vector<8x128xf32>
    %20 = vector.broadcast %8 : vector<1x128xf32> to vector<8x128xf32>
    %21 = arith.addf %19, %20 : vector<8x128xf32>
    %cst_13 = arith.constant 0.000000e+00 : f32
    %22 = vector.broadcast %cst_13 : f32 to vector<8x128xf32>
    %23 = arith.maximumf %21, %22 : vector<8x128xf32>
    %c0_14 = arith.constant 0 : index
    %c0_15 = arith.constant 0 : index
    %24 = vector.load %arg4[%c0_14, %c0_15] : memref<128x128xf32, #tpu.memory_space<vmem>>, vector<128x128xf32>
    %cst_16 = arith.constant dense<0.000000e+00> : vector<8x128xf32>
    %25 = tpu.matmul %23, %24, %cst_16 {dimension_numbers = #tpu.dot_dimension_numbers<[1], [0], [0], [1], [0, 0, 1, 1], [], []>, precision = #tpu.contract_precision<fp32>} : vector<8x128xf32>, vector<128x128xf32>, vector<8x128xf32> -> vector<8x128xf32>
    %26 = vector.broadcast %9 : vector<1x128xf32> to vector<8x128xf32>
    %27 = arith.addf %25, %26 : vector<8x128xf32>
    %28 = arith.addf %0, %27 : vector<8x128xf32>
    %c0_17 = arith.constant 0 : index
    %c0_18 = arith.constant 0 : index
    %29 = vector.load %arg6[%c0_17, %c0_18] : memref<8x128xf32, #tpu.memory_space<vmem>>, vector<8x128xf32>
    tpu.vector_store %arg6[%c0_17, %c0_18], %28 {strides = array<i32>} : memref<8x128xf32, #tpu.memory_space<vmem>>, vector<8x128xf32>,
    return
  }
  func.func @transform_0(%arg0: i32) -> (i32, i32) {
    %c0_i32 = arith.constant 0 : i32
    %c0_i32_0 = arith.constant 0 : i32
    return %arg0, %c0_i32 : i32, i32
  }
  func.func @transform_1(%arg0: i32) -> (i32, i32) {
    %c0_i32 = arith.constant 0 : i32
    %c0_i32_0 = arith.constant 0 : i32
    %c0_i32_1 = arith.constant 0 : i32
    return %c0_i32, %c0_i32_0 : i32, i32
  }
  func.func @transform_2(%arg0: i32) -> (i32, i32) {
    %c0_i32 = arith.constant 0 : i32
    %c0_i32_0 = arith.constant 0 : i32
    %c0_i32_1 = arith.constant 0 : i32
    return %c0_i32, %c0_i32_0 : i32, i32
  }
  func.func @transform_3(%arg0: i32) -> (i32, i32) {
    %c0_i32 = arith.constant 0 : i32
    %c0_i32_0 = arith.constant 0 : i32
    %c0_i32_1 = arith.constant 0 : i32
    return %c0_i32, %c0_i32_0 : i32, i32
  }
  func.func @transform_4(%arg0: i32) -> (i32, i32) {
    %c0_i32 = arith.constant 0 : i32
    %c0_i32_0 = arith.constant 0 : i32
    %c0_i32_1 = arith.constant 0 : i32
    return %c0_i32, %c0_i32_0 : i32, i32
  }
  func.func @transform_5(%arg0: i32) -> (i32, i32) {
    %c0_i32 = arith.constant 0 : i32
    %c0_i32_0 = arith.constant 0 : i32
    return %arg0, %c0_i32 : i32, i32
  }
}

</mosaic_0001>

<bundles_post_ra>
// kernel: tpu_custom_call.1
= control target key start
LH: loop header
LB: loop body
LE: loop exit
PB: predicated region body
PF: predicated region fallthrough
CT: control target
= control target key end

     0   :  { %10 = vsyncpa [#allocation3], 0  ;;  %s2619_s0 = inlined_call_operand.hbm [shape: f32[8,128], index: 0, kind: input, shape index: {}]   ;;  %s2620_s1 = inlined_call_operand.hbm [shape: f32[4,128], index: 1, kind: input, shape index: {}]   ;;  %s2621_s2 = inlined_call_operand.hbm [shape: f32[128,128], index: 2, kind: input, shape index: {}]   ;;  %s2622_s3 = inlined_call_operand.hbm [shape: f32[128,128], index: 3, kind: input, shape index: {}]   ;;  %s2623_s4 = inlined_call_operand.hbm [shape: f32[128,128], index: 4, kind: input, shape index: {}]   ;;  %s2624_s5 = inlined_call_operand.hbm [shape: f32[8,128], index: 5, kind: output, shape index: {}]  }
   0x1   :  { %11 = vsyncpa [#allocation6], 0 }
   0x2   :  { %12 = vsyncpa [#allocation9], 0  ;;  %s30_s20 = sshll.u32 %s2620_s1, 4  ;;  %s31_s20 = int_to_ptr.hbm [resolvable:$true] %s30_s20 }
   0x3   :  { %13 = vsyncpa [#allocation4], 0  ;;  %s1720_s21 = smov [#allocation5]   ;;  %s53_s25 = sshll.u32 %s2622_s3, 4  ;;  %s54_s25 = int_to_ptr.hbm [resolvable:$true] %s53_s25 }
   0x4   :  { %s32_s22 = sshll.u32 %s1720_s21, 4  ;;  %s1721_s26 = smov [#allocation8]   ;;  %s33_s22 = int_to_ptr.vmem [resolvable:$true] %s32_s22 }
   0x5   :  { %35 = dma.hbm_to_vmem [thread:$0]  %s31_s20, 64, %s33_s22, [#allocation6]  }
   0x6   :  { %s55_s27 = sshll.u32 %s1721_s26, 4  ;;  %s19_s30 = sshll.u32 %s2619_s0, 4  ;;  %s56_s27 = int_to_ptr.vmem [resolvable:$true] %s55_s27  ;;  %s20_s30 = int_to_ptr.hbm [resolvable:$true] %s19_s30 }
   0x7   :  { %s1722_s1 = smov 128   ;;  %s1723_s6 = smov 8  }
   0x8   :  { %61 = dma.hbm_to_vmem [thread:$0]  %s54_s25, 2048, %s56_s27, [#allocation9], %s1722_s1, %s1722_s1, %s1723_s6  }
   0x9   :  { %s40_s9 = sshll.u32 %s2621_s2, 4  ;;  %s1724_s10 = smov [#allocation2]   ;;  %s41_s9 = int_to_ptr.hbm [resolvable:$true] %s40_s9 }
   0xa   :  { %s21_s11 = sshll.u32 %s1724_s10, 4  ;;  %s1725_s3 = smov [#allocation7]   ;;  %s22_s11 = int_to_ptr.vmem [resolvable:$true] %s21_s11 }
   0xb   :  { %24 = dma.hbm_to_vmem [thread:$0]  %s20_s30, 128, %s22_s11, [#allocation3]  }
   0xc   :  { %s42_s12 = sshll.u32 %s1725_s3, 4  ;;  %s66_s0 = sshll.u32 %s2623_s4, 4  ;;  %s43_s12 = int_to_ptr.vmem [resolvable:$true] %s42_s12  ;;  %s67_s0 = int_to_ptr.hbm [resolvable:$true] %s66_s0 }
   0xd   :  { %48 = dma.hbm_to_vmem [thread:$0]  %s41_s9, 2048, %s43_s12, [#allocation6], %s1722_s1, %s1722_s1, %s1723_s6  }
   0xe   :  { %s1726_s15 = smov [#allocation10]  }
   0xf   :  { %s68_s16 = sshll.u32 %s1726_s15, 4  ;;  %s69_s16 = int_to_ptr.vmem [resolvable:$true] %s68_s16 }
  0x10   :  { %74 = dma.hbm_to_vmem [thread:$0]  %s67_s0, 2048, %s69_s16, [#allocation9], %s1722_s1, %s1722_s1, %s1723_s6  }
  0x11   :  { %1712 = dma.done.wait [#allocation3], 128  }
  0x12   :  { %1713 = vsyncadd [#allocation3], 4294967168 }
  0x13   :  { %1714 = dma.done.wait [#allocation6], 2112  }
  0x14   :  { %1715 = vsyncadd [#allocation6], 4294965184 }
  0x15   :  { %1716 = dma.done.wait [#allocation9], 4096  }
  0x16   :  { %1717 = vsyncadd [#allocation9], 4294963200  ;;  %v111_v0 = vld [vmem:[#allocation10 + $0x78] sm:$0xff]  ;;  %v110_v1 = vld [vmem:[#allocation10 + $0x70] sm:$0xff]  ;;  %s1727_s2 = smov [#allocation11]   ;;  %s1541_s19 = sshll.u32 %s2624_s5, 4  ;;  %s1542_s19 = int_to_ptr.hbm [resolvable:$true] %s1541_s19 }
  0x17   :  { %v109_v2 = vld [vmem:[#allocation10 + $0x68] sm:$0xff]  ;;  %v1773_v3 = vand.u32 4294901760, %v111_v0  ;;  %v1775_v4 = vand.u32 4294901760, %v110_v1  ;;  %v108_v6 = vld [vmem:[#allocation10 + $0x60] sm:$0xff]  ;;  %v107_v7 = vld [vmem:[#allocation10 + $0x58] sm:$0xff]  ;;  %s1539_s4 = sshll.u32 %s1727_s2, 4  ;;  %s1540_s4 = int_to_ptr.vmem [resolvable:$true] %s1539_s4 }
  0x18   :  { %v1777_v5 = vand.u32 4294901760, %v109_v2  ;;  %v106_v8 = vld [vmem:[#allocation10 + $0x50] sm:$0xff]  ;;  %v1779_v9 = vand.u32 4294901760, %v108_v6  ;;  %v1781_v10 = vand.u32 4294901760, %v107_v7  ;;  %v105_v12 = vld [vmem:[#allocation10 + $0x48] sm:$0xff]  ;;  %v104_v13 = vld [vmem:[#allocation10 + $0x40] sm:$0xff] }
  0x19   :  { %v1783_v11 = vand.u32 4294901760, %v106_v8  ;;  %113 = vmatpush.msra.mxu0 %v1773_v3  ;;  %v1787_v14 = vsub.f32 %v111_v0, %v1773_v3  ;;  %v1790_v15 = vsub.f32 %v110_v1, %v1775_v4  ;;  %v1795_v17 = vand.u32 4294901760, %v105_v12  ;;  %v103_v18 = vld [vmem:[#allocation10 + $0x38] sm:$0xff]  ;;  %309 = vmatpush.msra.mxu3 %v1773_v3  ;;  %v102_v26 = vld [vmem:[#allocation10 + $0x30] sm:$0xff]  ;;  %v101_v36 = vld [vmem:[#allocation10 + $0x28] sm:$0xff] }
  0x1a   :  { %v1793_v16 = vsub.f32 %v109_v2, %v1777_v5  ;;  %v1799_v19 = vsub.f32 %v108_v6, %v1779_v9  ;;  %v1802_v20 = vsub.f32 %v107_v7, %v1781_v10  ;;  %v1817_v25 = vand.u32 4294901760, %v104_v13  ;;  %v100_v42 = vld [vmem:[#allocation10 + $0x20] sm:$0xff]  ;;  %v99_v47 = vld [vmem:[#allocation10 + $0x18] sm:$0xff]  ;;  %v98_v55 = vld [vmem:[#allocation10 + $0x10] sm:$0xff] }
  0x1b   :  { %v1805_v21 = vsub.f32 %v106_v8, %v1783_v11  ;;  %115 = vmatpush.msra.mxu0 %v1775_v4  ;;  %v1809_v22 = vand.u32 4294901760, %v1787_v14  ;;  %v1812_v23 = vand.u32 4294901760, %v1790_v15  ;;  %256 = vmatpush.msra.mxu2 %v1787_v14  ;;  %v1823_v28 = vand.u32 4294901760, %v103_v18  ;;  %v97_v60 = vld [vmem:[#allocation10 + $0x8] sm:$0xff]  ;;  %v96_v1 = vld [vmem:[#allocation10] sm:$0xff]  ;;  %v1927_v7 = vld [vmem:[#allocation2] sm:$0xff] }
  0x1c   :  { %v1815_v24 = vand.u32 4294901760, %v1793_v16  ;;  %v1821_v27 = vand.u32 4294901760, %v1799_v19  ;;  %v1826_v29 = vsub.f32 %v105_v12, %v1795_v17  ;;  %311 = vmatpush.msra.mxu3 %v1775_v4  ;;  %v1837_v33 = vand.u32 4294901760, %v1802_v20  ;;  %2639 = vst [vmem:[#allocation22_spill] sm:$0xff] %v1927_v7 }
  0x1d   :  { %117 = vmatpush.msra.mxu0 %v1777_v5  ;;  %v156_v30 = vsub.f32 %v1787_v14, %v1809_v22  ;;  %v162_v31 = vsub.f32 %v1790_v15, %v1812_v23  ;;  %259 = vmatpush.msra.mxu2 %v1790_v15  ;;  %v1841_v34 = vand.u32 4294901760, %v1805_v21  ;;  %v1843_v35 = vand.u32 4294901760, %v102_v26 }
  0x1e   :  { %v168_v32 = vsub.f32 %v1793_v16, %v1815_v24  ;;  %313 = vmatpush.msra.mxu3 %v1777_v5  ;;  %v174_v39 = vsub.f32 %v1799_v19, %v1821_v27  ;;  %v1854_v40 = vsub.f32 %v104_v13, %v1817_v25  ;;  %v1858_v41 = vand.u32 4294901760, %v1826_v29 }
  0x1f   :  { %v1846_v37 = vand.u32 4294901760, %v156_v30  ;;  %119 = vmatpush.msra.mxu0 %v1779_v9  ;;  %v1849_v38 = vand.u32 4294901760, %v162_v31  ;;  %262 = vmatpush.msra.mxu2 %v1793_v16  ;;  %v180_v44 = vsub.f32 %v1802_v20, %v1837_v33  ;;  %v1867_v45 = vand.u32 4294901760, %v101_v36 }
  0x20   :  { %2633 = vst [vmem:[#allocation16_spill] sm:$0xff] %v1854_v40  ;;  %315 = vmatpush.msra.mxu3 %v1779_v9  ;;  %v1863_v43 = vand.u32 4294901760, %v168_v32  ;;  %v1870_v46 = vsub.f32 %v103_v18, %v1823_v28  ;;  %v186_v48 = vsub.f32 %v1805_v21, %v1841_v34  ;;  %v1878_v49 = vand.u32 4294901760, %v174_v39 }
  0x21   :  { %158 = vmatpush.msra.mxu1 %v1846_v37  ;;  %121 = vmatpush.msra.mxu0 %v1781_v10  ;;  %v1881_v50 = vand.u32 4294901760, %v1854_v40  ;;  %v1883_v51 = vand.u32 4294901760, %v100_v42  ;;  %v1886_v52 = vsub.f32 %v102_v26, %v1843_v35  ;;  %v192_v53 = vsub.f32 %v1826_v29, %v1858_v41 }
  0x22   :  { %2634 = vst [vmem:[#allocation17_spill] sm:$0xff] %v1870_v46  ;;  %265 = vmatpush.msra.mxu2 %v1799_v19  ;;  %317 = vmatpush.msra.mxu3 %v1781_v10  ;;  %v1890_v54 = vand.u32 4294901760, %v99_v47  ;;  %v1896_v56 = vand.u32 4294901760, %v180_v44  ;;  %v1899_v57 = vand.u32 4294901760, %v1870_v46  ;;  %v1902_v58 = vsub.f32 %v101_v36, %v1867_v45 }
  0x23   :  { %164 = vmatpush.msra.mxu1 %v1849_v38  ;;  %123 = vmatpush.msra.mxu0 %v1783_v11  ;;  %2635 = vst [vmem:[#allocation18_spill] sm:$0xff] %v1886_v52  ;;  %v1904_v59 = vand.u32 4294901760, %v186_v48  ;;  %v198_v61 = vsub.f32 %v1854_v40, %v1881_v50  ;;  %v1913_v62 = vand.u32 4294901760, %v1886_v52  ;;  %v1915_v63 = vand.u32 4294901760, %v98_v55 }
  0x24   :  { %268 = vmatpush.msra.mxu2 %v1802_v20  ;;  %319 = vmatpush.msra.mxu3 %v1783_v11  ;;  %2636 = vst [vmem:[#allocation19_spill] sm:$0xff] %v1902_v58  ;;  %v1918_v0 = vsub.f32 %v100_v42, %v1883_v51  ;;  %v1920_v2 = vand.u32 4294901760, %v192_v53  ;;  %v1923_v6 = vsub.f32 %v99_v47, %v1890_v54  ;;  %v1934_v12 = vand.u32 4294901760, %v1902_v58 }
  0x25   :  { %170 = vmatpush.msra.mxu1 %v1863_v43  ;;  %125 = vmatpush.msra.mxu0 %v1795_v17  ;;  %v204_v8 = vsub.f32 %v1870_v46, %v1899_v57  ;;  %v1936_v13 = vand.u32 4294901760, %v97_v60  ;;  %v1939_v18 = vand.u32 4294901760, %v1927_v7  ;;  %v1941_v26 = vand.u32 4294901760, %v96_v1 }
  0x26   :  { %271 = vmatpush.msra.mxu2 %v1805_v21  ;;  %321 = vmatpush.msra.mxu3 %v1795_v17  ;;  %2637 = vst [vmem:[#allocation20_spill] sm:$0xff] %v1918_v0  ;;  %v1947_v30 = vand.u32 4294901760, %v198_v61  ;;  %v210_v31 = vsub.f32 %v1886_v52, %v1913_v62  ;;  %v1952_v32 = vand.u32 4294901760, %v1918_v0  ;;  %v1955_v36 = vsub.f32 %v98_v55, %v1915_v63 }
  0x27   :  { %176 = vmatpush.msra.mxu1 %v1878_v49  ;;  %127 = vmatpush.msra.mxu0 %v1817_v25  ;;  %2638 = vst [vmem:[#allocation21_spill] sm:$0xff] %v1923_v6  ;;  %v1958_v39 = vand.u32 4294901760, %v1923_v6  ;;  %v1964_v42 = vand.u32 4294901760, %v204_v8  ;;  %v216_v44 = vsub.f32 %v1902_v58, %v1934_v12  ;;  %v1969_v47 = vsub.f32 %v97_v60, %v1936_v13 }
  0x28   :  { %274 = vmatpush.msra.mxu2 %v1826_v29  ;;  %323 = vmatpush.msra.mxu3 %v1817_v25  ;;  %2640 = vst [vmem:[#allocation23_spill] sm:$0xff] %v1955_v36  ;;  %v145_v48 = vsub.f32 %v1927_v7, %v1939_v18  ;;  %v1977_v53 = vand.u32 4294901760, %v210_v31  ;;  %v222_v55 = vsub.f32 %v1918_v0, %v1952_v32  ;;  %v1982_v61 = vand.u32 4294901760, %v1955_v36 }
  0x29   :  { %182 = vmatpush.msra.mxu1 %v1896_v56  ;;  %129 = vmatpush.msra.mxu0 %v1823_v28  ;;  %v1985_v60 = vsub.f32 %v96_v1, %v1941_v26  ;;  %v1991_v8 = vand.u32 4294901760, %v216_v44  ;;  %v228_v31 = vsub.f32 %v1923_v6, %v1958_v39  ;;  %v1996_v7 = vand.u32 4294901760, %v1969_v47 }
  0x2a   :  { %277 = vmatpush.msra.mxu2 %v1854_v40  ;;  %325 = vmatpush.msra.mxu3 %v1823_v28  ;;  %v2002_v1 = vand.u32 4294901760, %v222_v55  ;;  %v234_v44 = vsub.f32 %v1955_v36, %v1982_v61 }
  0x2b   :  { %188 = vmatpush.msra.mxu1 %v1904_v59  ;;  %131 = vmatpush.msra.mxu0 %v1843_v35  ;;  %v240_v55 = vsub.f32 %v1969_v47, %v1996_v7 }
  0x2c   :  { %280 = vmatpush.msra.mxu2 %v1870_v46  ;;  %327 = vmatpush.msra.mxu3 %v1843_v35 }
  0x2d   :  { %194 = vmatpush.msra.mxu1 %v1920_v2  ;;  %133 = vmatpush.msra.mxu0 %v1867_v45 }
  0x2e   :  { %283 = vmatpush.msra.mxu2 %v1886_v52  ;;  %329 = vmatpush.msra.mxu3 %v1867_v45  ;;  %v146_v52 = vand.u32 4294901760, %v145_v48 }
  0x2f   :  { %200 = vmatpush.msra.mxu1 %v1947_v30  ;;  %135 = vmatpush.msra.mxu0 %v1883_v51 }
  0x30   :  { %286 = vmatpush.msra.mxu2 %v1902_v58  ;;  %331 = vmatpush.msra.mxu3 %v1883_v51  ;;  %v2007_v58 = vand.u32 4294901760, %v1985_v60  ;;  %v147_v46 = vsub.f32 %v145_v48, %v146_v52 }
  0x31   :  { %206 = vmatpush.msra.mxu1 %v1964_v42  ;;  %137 = vmatpush.msra.mxu0 %v1890_v54 }
  0x32   :  { %289 = vmatpush.msra.mxu2 %v1918_v0  ;;  %333 = vmatpush.msra.mxu3 %v1890_v54  ;;  %v2013_v0 = vand.u32 4294901760, %v228_v31  ;;  %v246_v40 = vsub.f32 %v1985_v60, %v2007_v58  ;;  %v2028_v31 = vand.u32 4294901760, %v240_v55 }
  0x33   :  { %212 = vmatpush.msra.mxu1 %v1977_v53  ;;  %139 = vmatpush.msra.mxu0 %v1915_v63 }
  0x34   :  { %292 = vmatpush.msra.mxu2 %v1923_v6  ;;  %335 = vmatpush.msra.mxu3 %v1915_v63  ;;  %v2021_v6 = vand.u32 4294901760, %v234_v44  ;;  %v2034_v44 = vand.u32 4294901760, %v246_v40 }
  0x35   :  { %218 = vmatpush.msra.mxu1 %v1991_v8  ;;  %141 = vmatpush.msra.mxu0 %v1936_v13 }
  0x36   :  { %295 = vmatpush.msra.mxu2 %v1955_v36  ;;  %337 = vmatpush.msra.mxu3 %v1936_v13  ;;  %v148_v36 = vand.u32 4294901760, %v147_v46 }
  0x37   :  { %224 = vmatpush.msra.mxu1 %v2002_v1  ;;  %143 = vmatpush.msra.mxu0 %v1941_v26 }
  0x38   :  { %298 = vmatpush.msra.mxu2 %v1969_v47  ;;  %339 = vmatpush.msra.mxu3 %v1941_v26 }
  0x39   :  { %350 = vmatpush.msrb.mxu0 %v1809_v22  ;;  %230 = vmatpush.msra.mxu1 %v2013_v0 }
  0x3a   :  { %301 = vmatpush.msra.mxu2 %v1985_v60  ;;  %343 = vmatmul.f32.vlgmr.msra.gmra.mxu3 %v146_v52 }
  0x3b   :  { %354 = vmatpush.msrb.mxu0 %v1812_v23  ;;  %236 = vmatpush.msra.mxu1 %v2021_v6 }
  0x3c   :  { %304 = vmatmul.f32.vlgmr.msra.gmra.mxu2 %v145_v48  ;;  %149 = vmatmul.f32.vlgmr.msra.gmra.mxu0 %v148_v36 }
  0x3d   :  { %358 = vmatpush.msrb.mxu0 %v1815_v24  ;;  %242 = vmatpush.msra.mxu1 %v2028_v31 }
  0x3e   :  { %505 = vmatpush.msrb.mxu3 %v1846_v37  ;;  %460 = vmatpush.msrb.mxu2 %v1773_v3 }
  0x3f   :  { %362 = vmatpush.msrb.mxu0 %v1821_v27  ;;  %248 = vmatpush.msra.mxu1 %v2034_v44 }
  0x40   :  { %250 = vmatmul.f32.vlgmr.msra.gmra.mxu1 %v1939_v18  ;;  %511 = vmatpush.msrb.mxu3 %v1849_v38 }
  0x41   :  { %417 = vmatpush.msrb.mxu1 %v1773_v3  ;;  %366 = vmatpush.msrb.mxu0 %v1837_v33 }
  0x42   :  { %517 = vmatpush.msrb.mxu3 %v1863_v43  ;;  %462 = vmatpush.msrb.mxu2 %v1775_v4 }
  0x43   :  { %419 = vmatpush.msrb.mxu1 %v1775_v4  ;;  %370 = vmatpush.msrb.mxu0 %v1841_v34 }
  0x44   :  { %523 = vmatpush.msrb.mxu3 %v1878_v49  ;;  %464 = vmatpush.msrb.mxu2 %v1777_v5  ;;  %v2648_v49 = vld [vmem:[#allocation22_spill] sm:$0xff] }
  0x45   :  { %421 = vmatpush.msrb.mxu1 %v1777_v5  ;;  %374 = vmatpush.msrb.mxu0 %v1858_v41 }
  0x46   :  { %529 = vmatpush.msrb.mxu3 %v1896_v56  ;;  %466 = vmatpush.msrb.mxu2 %v1779_v9 }
  0x47   :  { %423 = vmatpush.msrb.mxu1 %v1779_v9  ;;  %378 = vmatpush.msrb.mxu0 %v1881_v50 }
  0x48   :  { %535 = vmatpush.msrb.mxu3 %v1904_v59  ;;  %468 = vmatpush.msrb.mxu2 %v1781_v10  ;;  %v828_v59 = vld [vmem:[#allocation7 + $0x68] sm:$0xff] }
  0x49   :  { %425 = vmatpush.msrb.mxu1 %v1781_v10  ;;  %382 = vmatpush.msrb.mxu0 %v1899_v57 }
  0x4a   :  { %541 = vmatpush.msrb.mxu3 %v1920_v2  ;;  %470 = vmatpush.msrb.mxu2 %v1783_v11 }
  0x4b   :  { %427 = vmatpush.msrb.mxu1 %v1783_v11  ;;  %386 = vmatpush.msrb.mxu0 %v1913_v62 }
  0x4c   :  { %547 = vmatpush.msrb.mxu3 %v1947_v30  ;;  %472 = vmatpush.msrb.mxu2 %v1795_v17 }
  0x4d   :  { %429 = vmatpush.msrb.mxu1 %v1795_v17  ;;  %390 = vmatpush.msrb.mxu0 %v1934_v12 }
  0x4e   :  { %553 = vmatpush.msrb.mxu3 %v1964_v42  ;;  %474 = vmatpush.msrb.mxu2 %v1817_v25 }
  0x4f   :  { %431 = vmatpush.msrb.mxu1 %v1817_v25  ;;  %394 = vmatpush.msrb.mxu0 %v1952_v32 }
  0x50   :  { %559 = vmatpush.msrb.mxu3 %v1977_v53  ;;  %476 = vmatpush.msrb.mxu2 %v1823_v28 }
  0x51   :  { %433 = vmatpush.msrb.mxu1 %v1823_v28  ;;  %398 = vmatpush.msrb.mxu0 %v1958_v39 }
  0x52   :  { %565 = vmatpush.msrb.mxu3 %v1991_v8  ;;  %478 = vmatpush.msrb.mxu2 %v1843_v35 }
  0x53   :  { %435 = vmatpush.msrb.mxu1 %v1843_v35  ;;  %402 = vmatpush.msrb.mxu0 %v1982_v61 }
  0x54   :  { %571 = vmatpush.msrb.mxu3 %v2002_v1  ;;  %480 = vmatpush.msrb.mxu2 %v1867_v45 }
  0x55   :  { %437 = vmatpush.msrb.mxu1 %v1867_v45  ;;  %406 = vmatpush.msrb.mxu0 %v1996_v7 }
  0x56   :  { %577 = vmatpush.msrb.mxu3 %v2013_v0  ;;  %482 = vmatpush.msrb.mxu2 %v1883_v51 }
  0x57   :  { %439 = vmatpush.msrb.mxu1 %v1883_v51  ;;  %410 = vmatpush.msrb.mxu0 %v2007_v58 }
  0x58   :  { %412 = vmatmul.f32.vlgmr.msrb.gmra.mxu0 %v1939_v18  ;;  %583 = vmatpush.msrb.mxu3 %v2021_v6  ;;  %v826_v6 = vld [vmem:[#allocation7 + $0x58] sm:$0xff] }
  0x59   :  { %441 = vmatpush.msrb.mxu1 %v1890_v54  ;;  %603 = vmatpush.msra.mxu0 %v1787_v14  ;;  %v2647_v14 = vld [vmem:[#allocation23_spill] sm:$0xff] }
  0x5a   :  { %589 = vmatpush.msrb.mxu3 %v2028_v31  ;;  %484 = vmatpush.msrb.mxu2 %v1890_v54 }
  0x5b   :  { %443 = vmatpush.msrb.mxu1 %v1915_v63  ;;  %606 = vmatpush.msra.mxu0 %v1790_v15 }
  0x5c   :  { %595 = vmatpush.msrb.mxu3 %v2034_v44  ;;  %486 = vmatpush.msrb.mxu2 %v1915_v63 }
  0x5d   :  { %445 = vmatpush.msrb.mxu1 %v1936_v13  ;;  %609 = vmatpush.msra.mxu0 %v1793_v16 }
  0x5e   :  { %764 = vmatpush.msra.mxu3 %v1773_v3  ;;  %488 = vmatpush.msrb.mxu2 %v1936_v13 }
  0x5f   :  { %447 = vmatpush.msrb.mxu1 %v1941_v26  ;;  %612 = vmatpush.msra.mxu0 %v1799_v19 }
  0x60   :  { %449 = vmatmul.f32.vlgmr.msrb.gmra.mxu1 %v1939_v18  ;;  %766 = vmatpush.msra.mxu3 %v1775_v4  ;;  %v825_v18 = vld [vmem:[#allocation7 + $0x50] sm:$0xff] }
  0x61   :  { %656 = vmatpush.msra.mxu1 %v1773_v3  ;;  %615 = vmatpush.msra.mxu0 %v1802_v20  ;;  %v2641_v3 = vld [vmem:[#allocation16_spill] sm:$0xff]  ;;  %v2221_v36 = vand.u32 4294901760, %v825_v18 }
  0x62   :  { %768 = vmatpush.msra.mxu3 %v1777_v5  ;;  %490 = vmatpush.msrb.mxu2 %v1941_v26 }
  0x63   :  { %658 = vmatpush.msra.mxu1 %v1775_v4  ;;  %618 = vmatpush.msra.mxu0 %v1805_v21  ;;  %v2642_v4 = vld [vmem:[#allocation17_spill] sm:$0xff]  ;;  %v2231_v53 = vsub.f32 %v825_v18, %v2221_v36 }
  0x64   :  { %770 = vmatpush.msra.mxu3 %v1779_v9  ;;  %697 = vmatpush.msra.mxu2 %v1809_v22  ;;  %v830_v22 = vld [vmem:[#allocation7 + $0x78] sm:$0xff] }
  0x65   :  { %660 = vmatpush.msra.mxu1 %v1777_v5  ;;  %621 = vmatpush.msra.mxu0 %v1826_v29  ;;  %v2643_v5 = vld [vmem:[#allocation18_spill] sm:$0xff]  ;;  %v905_v55 = vand.u32 4294901760, %v2231_v53 }
  0x66   :  { %772 = vmatpush.msra.mxu3 %v1781_v10  ;;  %701 = vmatpush.msra.mxu2 %v1812_v23  ;;  %v829_v23 = vld [vmem:[#allocation7 + $0x70] sm:$0xff] }
  0x67   :  { %662 = vmatpush.msra.mxu1 %v1779_v9  ;;  %624 = vmatpush.msra.mxu0 %v2641_v3  ;;  %v2644_v9 = vld [vmem:[#allocation19_spill] sm:$0xff]  ;;  %v822_v3 = vld [vmem:[#allocation7 + $0x38] sm:$0xff] }
  0x68   :  { %774 = vmatpush.msra.mxu3 %v1783_v11  ;;  %705 = vmatpush.msra.mxu2 %v1815_v24  ;;  %v2167_v24 = vand.u32 4294901760, %v830_v22 }
  0x69   :  { %664 = vmatpush.msra.mxu1 %v1781_v10  ;;  %627 = vmatpush.msra.mxu0 %v2642_v4  ;;  %v2645_v10 = vld [vmem:[#allocation20_spill] sm:$0xff] }
  0x6a   :  { %776 = vmatpush.msra.mxu3 %v1795_v17  ;;  %709 = vmatpush.msra.mxu2 %v1821_v27  ;;  %v2172_v29 = vsub.f32 %v830_v22, %v2167_v24 }
  0x6b   :  { %666 = vmatpush.msra.mxu1 %v1783_v11  ;;  %630 = vmatpush.msra.mxu0 %v2643_v5  ;;  %v2646_v11 = vld [vmem:[#allocation21_spill] sm:$0xff]  ;;  %v906_v5 = vsub.f32 %v2231_v53, %v905_v55 }
  0x6c   :  { %778 = vmatpush.msra.mxu3 %v1817_v25  ;;  %713 = vmatpush.msra.mxu2 %v1837_v33 }
  0x6d   :  { %668 = vmatpush.msra.mxu1 %v1795_v17  ;;  %633 = vmatpush.msra.mxu0 %v2644_v9 }
  0x6e   :  { %780 = vmatpush.msra.mxu3 %v1823_v28  ;;  %717 = vmatpush.msra.mxu2 %v1841_v34  ;;  %v875_v34 = vand.u32 4294901760, %v2172_v29 }
  0x6f   :  { %670 = vmatpush.msra.mxu1 %v1817_v25  ;;  %636 = vmatpush.msra.mxu0 %v2645_v10  ;;  %v2169_v25 = vand.u32 4294901760, %v829_v23  ;;  %v2256_v10 = vand.u32 4294901760, %v822_v3 }
  0x70   :  { %782 = vmatpush.msra.mxu3 %v1843_v35  ;;  %721 = vmatpush.msra.mxu2 %v1858_v41  ;;  %v876_v40 = vsub.f32 %v2172_v29, %v875_v34 }
  0x71   :  { %672 = vmatpush.msra.mxu1 %v1823_v28  ;;  %639 = vmatpush.msra.mxu0 %v2646_v11  ;;  %v2175_v33 = vsub.f32 %v829_v23, %v2169_v25 }
  0x72   :  { %784 = vmatpush.msra.mxu3 %v1867_v45  ;;  %725 = vmatpush.msra.mxu2 %v1881_v50 }
  0x73   :  { %674 = vmatpush.msra.mxu1 %v1843_v35  ;;  %642 = vmatpush.msra.mxu0 %v2647_v14  ;;  %v881_v35 = vand.u32 4294901760, %v2175_v33  ;;  %v821_v14 = vld [vmem:[#allocation7 + $0x30] sm:$0xff] }
  0x74   :  { %786 = vmatpush.msra.mxu3 %v1883_v51  ;;  %729 = vmatpush.msra.mxu2 %v1899_v57 }
  0x75   :  { %676 = vmatpush.msra.mxu1 %v1867_v45  ;;  %645 = vmatpush.msra.mxu0 %v1969_v47  ;;  %v882_v41 = vsub.f32 %v2175_v33, %v881_v35  ;;  %v877_v45 = vand.u32 4294901760, %v876_v40 }
  0x76   :  { %788 = vmatpush.msra.mxu3 %v1890_v54  ;;  %733 = vmatpush.msra.mxu2 %v1913_v62  ;;  %v2196_v62 = vand.u32 4294901760, %v828_v59 }
  0x77   :  { %678 = vmatpush.msra.mxu1 %v1883_v51  ;;  %648 = vmatpush.msra.mxu0 %v1985_v60  ;;  %v883_v46 = vand.u32 4294901760, %v882_v41  ;;  %v823_v60 = vld [vmem:[#allocation7 + $0x40] sm:$0xff] }
  0x78   :  { %790 = vmatpush.msra.mxu3 %v1915_v63  ;;  %737 = vmatpush.msra.mxu2 %v1934_v12  ;;  %v2199_v0 = vsub.f32 %v828_v59, %v2196_v62  ;;  %v2242_v31 = vand.u32 4294901760, %v823_v60 }
  0x79   :  { %680 = vmatpush.msra.mxu1 %v1890_v54  ;;  %833 = vmatpush.msrb.mxu0 %v2167_v24 }
  0x7a   :  { %792 = vmatpush.msra.mxu3 %v1936_v13  ;;  %741 = vmatpush.msra.mxu2 %v1952_v32  ;;  %v2254_v9 = vsub.f32 %v823_v60, %v2242_v31 }
  0x7b   :  { %682 = vmatpush.msra.mxu1 %v1915_v63  ;;  %835 = vmatpush.msrb.mxu0 %v2169_v25  ;;  %v827_v63 = vld [vmem:[#allocation7 + $0x60] sm:$0xff] }
  0x7c   :  { %794 = vmatpush.msra.mxu3 %v1941_v26  ;;  %745 = vmatpush.msra.mxu2 %v1958_v39  ;;  %v2201_v2 = vand.u32 4294901760, %v827_v63  ;;  %v824_v39 = vld [vmem:[#allocation7 + $0x48] sm:$0xff] }
  0x7d   :  { %684 = vmatpush.msra.mxu1 %v1936_v13  ;;  %837 = vmatpush.msrb.mxu0 %v2196_v62  ;;  %v2209_v13 = vand.u32 4294901760, %v826_v6 }
  0x7e   :  { %749 = vmatpush.msra.mxu2 %v1982_v61  ;;  %v2207_v12 = vsub.f32 %v827_v63, %v2201_v2  ;;  %v2235_v61 = vand.u32 4294901760, %v824_v39 }
  0x7f   :  { %686 = vmatpush.msra.mxu1 %v1941_v26  ;;  %839 = vmatpush.msrb.mxu0 %v2201_v2  ;;  %v2219_v32 = vsub.f32 %v826_v6, %v2209_v13 }
  0x80   :  { %753 = vmatpush.msra.mxu2 %v1996_v7  ;;  %v887_v7 = vand.u32 4294901760, %v2199_v0  ;;  %v893_v30 = vand.u32 4294901760, %v2207_v12  ;;  %v2246_v44 = vsub.f32 %v824_v39, %v2235_v61  ;;  %v816_v39 = vld [vmem:[#allocation7 + $0x8] sm:$0xff] }
  0x81   :  { %878 = vmatpush.msrb.mxu1 %v877_v45  ;;  %841 = vmatpush.msrb.mxu0 %v2209_v13  ;;  %v899_v48 = vand.u32 4294901760, %v2219_v32 }
  0x82   :  { %757 = vmatpush.msra.mxu2 %v2007_v58  ;;  %v888_v26 = vsub.f32 %v2199_v0, %v887_v7  ;;  %v894_v47 = vsub.f32 %v2207_v12, %v893_v30  ;;  %v911_v11 = vand.u32 4294901760, %v2246_v44 }
  0x83   :  { %884 = vmatpush.msrb.mxu1 %v883_v46  ;;  %843 = vmatpush.msrb.mxu0 %v2221_v36  ;;  %v900_v1 = vsub.f32 %v2219_v32, %v899_v48 }
  0x84   :  { %v889_v42 = vand.u32 4294901760, %v888_v26  ;;  %v895_v8 = vand.u32 4294901760, %v894_v47 }
  0x85   :  { %845 = vmatpush.msrb.mxu0 %v2235_v61  ;;  %v901_v4 = vand.u32 4294901760, %v900_v1 }
  0x86   :  { %890 = vmatpush.msrb.mxu1 %v889_v42 }
  0x87   :  { %847 = vmatpush.msrb.mxu0 %v2242_v31 }
  0x88   :  { %896 = vmatpush.msrb.mxu1 %v895_v8  ;;  %v2324_v8 = vand.u32 4294901760, %v816_v39 }
  0x89   :  { %849 = vmatpush.msrb.mxu0 %v2256_v10 }
  0x8a   :  { %902 = vmatpush.msrb.mxu1 %v901_v4 }
  0xb9   :  { %v150_v16 = vpop.f32.mrf.mxu0 }
  0xbd   :  { %v251_v15 = vpop.f32.mrf.mxu1  ;;  %v344_v21 = vpop.f32.mrf.mxu3 }
  0xbe   :  { %v252_v17 = vadd.f32 %v251_v15, %v150_v16  ;;  %v907_v15 = vand.u32 4294901760, %v906_v5  ;;  %v917_v16 = vand.u32 4294901760, %v2254_v9 }
  0xbf   :  { %v305_v19 = vpop.f32.mrf.mxu2 }
  0xc0   :  { %v306_v20 = vadd.f32 %v305_v19, %v252_v17  ;;  %v2263_v17 = vsub.f32 %v822_v3, %v2256_v10  ;;  %v2265_v19 = vand.u32 4294901760, %v821_v14  ;;  %908 = vmatpush.msrb.mxu1 %v907_v15  ;;  %v918_v22 = vsub.f32 %v2254_v9, %v917_v16  ;;  %v815_v3 = vld [vmem:[#allocation7] sm:$0xff] }
  0xc1   :  { %v2333_v15 = vand.u32 4294901760, %v815_v3 }
  0xc2   :  { %v345_v27 = vadd.f32 %v344_v21, %v306_v20  ;;  %v912_v20 = vsub.f32 %v2246_v44, %v911_v11  ;;  %v820_v21 = vld [vmem:[#allocation7 + $0x28] sm:$0xff]  ;;  %v923_v23 = vand.u32 4294901760, %v2263_v17  ;;  %851 = vmatpush.msrb.mxu0 %v2265_v19  ;;  %v919_v40 = vand.u32 4294901760, %v918_v22 }
  0xc4   :  { %v924_v41 = vsub.f32 %v2263_v17, %v923_v23 }
  0xd5   :  { %v413_v28 = vpop.f32.mrf.mxu0 }
  0xd6   :  { %v414_v37 = vadd.f32 %v413_v28, %v345_v27  ;;  %v2278_v27 = vsub.f32 %v821_v14, %v2265_v19  ;;  %v2280_v28 = vand.u32 4294901760, %v820_v21  ;;  %v958_v14 = vsub.f32 %v816_v39, %v2324_v8 }
  0xd8   :  { %v2290_v45 = vsub.f32 %v820_v21, %v2280_v28  ;;  %853 = vmatpush.msrb.mxu0 %v2280_v28 }
  0xdd   :  { %v450_v38 = vpop.f32.mrf.mxu1 }
  0xde   :  { %v451_v43 = vadd.f32 %v450_v38, %v414_v37  ;;  %v913_v37 = vand.u32 4294901760, %v912_v20  ;;  %v819_v38 = vld [vmem:[#allocation7 + $0x20] sm:$0xff] }
  0xdf   :  { %v2293_v46 = vand.u32 4294901760, %v819_v38 }
  0xe0   :  { %v2188_v50 = vsub.f32 %v2648_v49, %v451_v43  ;;  %v929_v43 = vand.u32 4294901760, %v2278_v27  ;;  %914 = vmatpush.msrb.mxu1 %v913_v37  ;;  %v818_v49 = vld [vmem:[#allocation7 + $0x18] sm:$0xff]  ;;  %v959_v37 = vand.u32 4294901760, %v958_v14 }
  0xe1   :  { %855 = vmatpush.msrb.mxu0 %v2293_v46 }
  0xe2   :  { %v454_v51 = vmul.f32 %v2188_v50, %v2188_v50  ;;  %920 = vmatpush.msrb.mxu1 %v919_v40 }
  0xe4   :  { %v491_v52 = vand.u32 4294901760, %v454_v51 }
  0xe6   :  { %v492_v54 = vsub.f32 %v454_v51, %v491_v52  ;;  %597 = vmatmul.f32.vlgmr.msrb.gmra.mxu3 %v491_v52  ;;  %v925_v51 = vand.u32 4294901760, %v924_v41  ;;  %v960_v41 = vsub.f32 %v958_v14, %v959_v37 }
  0xe7   :  { %1029 = vmatpush.msrb.mxu3 %v2167_v24 }
  0xe8   :  { %651 = vmatmul.f32.vlgmr.msra.gmra.mxu0 %v492_v54  ;;  %v493_v56 = vand.u32 4294901760, %v492_v54  ;;  %926 = vmatpush.msrb.mxu1 %v925_v51  ;;  %v961_v51 = vand.u32 4294901760, %v960_v41  ;;  %v1179_v41 = vld [vmem:[#allocation8 + $0x28] sm:$0xff] }
  0xe9   :  { %1031 = vmatpush.msrb.mxu3 %v2169_v25 }
  0xea   :  { %690 = vmatmul.f32.vlgmr.msra.gmra.mxu1 %v493_v56  ;;  %v494_v57 = vsub.f32 %v492_v54, %v493_v56  ;;  %v935_v54 = vand.u32 4294901760, %v2290_v45  ;;  %v2300_v56 = vand.u32 4294901760, %v818_v49 }
  0xeb   :  { %1033 = vmatpush.msrb.mxu3 %v2196_v62 }
  0xec   :  { %v495_v58 = vand.u32 4294901760, %v494_v57  ;;  %v2305_v57 = vsub.f32 %v819_v38, %v2293_v46  ;;  %v936_v63 = vsub.f32 %v2290_v45, %v935_v54  ;;  %v2312_v6 = vsub.f32 %v818_v49, %v2300_v56  ;;  %857 = vmatpush.msrb.mxu0 %v2300_v56 }
  0xed   :  { %1035 = vmatpush.msrb.mxu3 %v2201_v2  ;;  %v964_v38 = vsub.f32 %v815_v3, %v2333_v15 }
  0xee   :  { %496 = vmatmul.f32.vlgmr.msrb.gmra.mxu2 %v495_v58  ;;  %796 = vmatmul.f32.vlgmr.msra.gmra.mxu3 %v491_v52  ;;  %v817_v58 = vld [vmem:[#allocation7 + $0x10] sm:$0xff]  ;;  %v941_v26 = vand.u32 4294901760, %v2305_v57  ;;  %v937_v42 = vand.u32 4294901760, %v936_v63  ;;  %v947_v47 = vand.u32 4294901760, %v2312_v6 }
  0xef   :  { %976 = vmatpush.msrb.mxu2 %v2172_v29  ;;  %1037 = vmatpush.msrb.mxu3 %v2209_v13  ;;  %v2314_v18 = vand.u32 4294901760, %v817_v58  ;;  %v965_v49 = vand.u32 4294901760, %v964_v38 }
  0xf0   :  { %v942_v1 = vsub.f32 %v2305_v57, %v941_v26  ;;  %v948_v4 = vsub.f32 %v2312_v6, %v947_v47 }
  0xf1   :  { %979 = vmatpush.msrb.mxu2 %v2175_v33  ;;  %1039 = vmatpush.msrb.mxu3 %v2221_v36  ;;  %v2322_v60 = vsub.f32 %v817_v58, %v2314_v18 }
  0xf2   :  { %859 = vmatpush.msrb.mxu0 %v2314_v18  ;;  %v943_v20 = vand.u32 4294901760, %v942_v1  ;;  %v949_v21 = vand.u32 4294901760, %v948_v4  ;;  %v1562_v1 = vld [vmem:[#allocation5 + $0x1] ss:$0 sm:$0xff] }
  0xf3   :  { %982 = vmatpush.msrb.mxu2 %v2199_v0  ;;  %1041 = vmatpush.msrb.mxu3 %v2235_v61  ;;  %v953_v5 = vand.u32 4294901760, %v2322_v60 }
  0xf4   :  { %861 = vmatpush.msrb.mxu0 %v2324_v8 }
  0xf5   :  { %985 = vmatpush.msrb.mxu2 %v2207_v12  ;;  %1043 = vmatpush.msrb.mxu3 %v2242_v31  ;;  %v954_v22 = vsub.f32 %v2322_v60, %v953_v5 }
  0xf6   :  { %759 = vmatmul.f32.vlgmr.msra.gmra.mxu2 %v491_v52  ;;  %v930_v52 = vsub.f32 %v2278_v27, %v929_v43  ;;  %863 = vmatpush.msrb.mxu0 %v2333_v15 }
  0xf7   :  { %988 = vmatpush.msrb.mxu2 %v2219_v32  ;;  %1045 = vmatpush.msrb.mxu3 %v2256_v10  ;;  %v955_v40 = vand.u32 4294901760, %v954_v22  ;;  %v1181_v22 = vld [vmem:[#allocation8 + $0x38] sm:$0xff] }
  0xf8   :  { %v931_v59 = vand.u32 4294901760, %v930_v52  ;;  %1070 = vmatpush.msra.mxu0 %v875_v34  ;;  %v966_v52 = vsub.f32 %v964_v38, %v965_v49 }
  0xf9   :  { %991 = vmatpush.msrb.mxu2 %v2231_v53  ;;  %1047 = vmatpush.msrb.mxu3 %v2265_v19  ;;  %v1188_v53 = vld [vmem:[#allocation8 + $0x70] sm:$0xff] }
  0xfa   :  { %932 = vmatpush.msrb.mxu1 %v931_v59  ;;  %1074 = vmatpush.msra.mxu0 %v881_v35 }
  0xfb   :  { %994 = vmatpush.msrb.mxu2 %v2246_v44  ;;  %1049 = vmatpush.msrb.mxu3 %v2280_v28  ;;  %v2384_v44 = vand.u32 4294901760, %v1188_v53 }
  0xfc   :  { %938 = vmatpush.msrb.mxu1 %v937_v42  ;;  %1078 = vmatpush.msra.mxu0 %v887_v7 }
  0xfd   :  { %997 = vmatpush.msrb.mxu2 %v2254_v9  ;;  %1051 = vmatpush.msrb.mxu3 %v2293_v46 }
  0xfe   :  { %944 = vmatpush.msrb.mxu1 %v943_v20  ;;  %1082 = vmatpush.msra.mxu0 %v893_v30 }
  0xff   :  { %1000 = vmatpush.msrb.mxu2 %v2263_v17  ;;  %1053 = vmatpush.msrb.mxu3 %v2300_v56 }
 0x100   :  { %950 = vmatpush.msrb.mxu1 %v949_v21  ;;  %1086 = vmatpush.msra.mxu0 %v899_v48  ;;  %v1189_v48 = vld [vmem:[#allocation8 + $0x78] sm:$0xff]  ;;  %v1182_v21 = vld [vmem:[#allocation8 + $0x40] sm:$0xff] }
 0x101   :  { %1003 = vmatpush.msrb.mxu2 %v2278_v27  ;;  %1055 = vmatpush.msrb.mxu3 %v2314_v18 }
 0x102   :  { %956 = vmatpush.msrb.mxu1 %v955_v40  ;;  %1090 = vmatpush.msra.mxu0 %v905_v55 }
 0x103   :  { %1006 = vmatpush.msrb.mxu2 %v2290_v45  ;;  %1057 = vmatpush.msrb.mxu3 %v2324_v8 }
 0x104   :  { %962 = vmatpush.msrb.mxu1 %v961_v51  ;;  %1094 = vmatpush.msra.mxu0 %v911_v11  ;;  %v1185_v11 = vld [vmem:[#allocation8 + $0x58] sm:$0xff] }
 0x105   :  { %1009 = vmatpush.msrb.mxu2 %v2305_v57  ;;  %1059 = vmatpush.msrb.mxu3 %v2333_v15  ;;  %v967_v57 = vand.u32 4294901760, %v966_v52  ;;  %v2390_v17 = vand.u32 4294901760, %v1185_v11  ;;  %v1178_v52 = vld [vmem:[#allocation8 + $0x20] sm:$0xff] }
 0x106   :  { %1098 = vmatpush.msra.mxu0 %v917_v16 }
 0x107   :  { %1012 = vmatpush.msrb.mxu2 %v2312_v6  ;;  %968 = vmatpush.msrb.mxu1 %v967_v57 }
 0x108   :  { %1102 = vmatpush.msra.mxu0 %v923_v23  ;;  %v1183_v23 = vld [vmem:[#allocation8 + $0x48] sm:$0xff] }
 0x109   :  { %1015 = vmatpush.msrb.mxu2 %v2322_v60  ;;  %1137 = vmatpush.msra.mxu1 %v2167_v24  ;;  %v2410_v58 = vand.u32 4294901760, %v1183_v23 }
 0x10a   :  { %1106 = vmatpush.msra.mxu0 %v929_v43  ;;  %v2396_v43 = vsub.f32 %v1188_v53, %v2384_v44 }
 0x10b   :  { %1018 = vmatpush.msrb.mxu2 %v958_v14  ;;  %1139 = vmatpush.msra.mxu1 %v2169_v25  ;;  %v2424_v60 = vsub.f32 %v1183_v23, %v2410_v58  ;;  %v1175_v23 = vld [vmem:[#allocation8 + $0x8] sm:$0xff] }
 0x10c   :  { %1110 = vmatpush.msra.mxu0 %v935_v54  ;;  %v2406_v54 = vsub.f32 %v1185_v11, %v2390_v17  ;;  %v1240_v6 = vand.u32 4294901760, %v2396_v43 }
 0x10d   :  { %1021 = vmatpush.msrb.mxu2 %v964_v38  ;;  %1141 = vmatpush.msra.mxu1 %v2196_v62 }
 0x10e   :  { %1114 = vmatpush.msra.mxu0 %v941_v26  ;;  %v1561_v26 = vld [vmem:[#allocation5] ss:$0 sm:$0xff]  ;;  %v1258_v42 = vand.u32 4294901760, %v2406_v54  ;;  %v1241_v4 = vsub.f32 %v2396_v43, %v1240_v6 }
 0x10f   :  { %1143 = vmatpush.msra.mxu1 %v2201_v2 }
 0x110   :  { %1118 = vmatpush.msra.mxu0 %v947_v47  ;;  %v1242_v40 = vand.u32 4294901760, %v1241_v4  ;;  %v1259_v51 = vsub.f32 %v2406_v54, %v1258_v42 }
 0x111   :  { %1145 = vmatpush.msra.mxu1 %v2209_v13 }
 0x112   :  { %1122 = vmatpush.msra.mxu0 %v953_v5 }
 0x113   :  { %1147 = vmatpush.msra.mxu1 %v2221_v36 }
 0x114   :  { %1126 = vmatpush.msra.mxu0 %v959_v37  ;;  %v1180_v37 = vld [vmem:[#allocation8 + $0x30] sm:$0xff] }
 0x115   :  { %1149 = vmatpush.msra.mxu1 %v2235_v61  ;;  %v1187_v61 = vld [vmem:[#allocation8 + $0x68] sm:$0xff] }
 0x116   :  { %1130 = vmatpush.msra.mxu0 %v965_v49  ;;  %v2386_v9 = vand.u32 4294901760, %v1187_v61 }
 0x117   :  { %1151 = vmatpush.msra.mxu1 %v2242_v31  ;;  %v2382_v31 = vand.u32 4294901760, %v1189_v48 }
 0x118   :  { %v2399_v45 = vsub.f32 %v1187_v61, %v2386_v9 }
 0x119   :  { %1153 = vmatpush.msra.mxu1 %v2256_v10  ;;  %v1186_v10 = vld [vmem:[#allocation8 + $0x60] sm:$0xff]  ;;  %1192 = vmatpush.msra.mxu2 %v2382_v31 }
 0x11a   :  { %v2388_v16 = vand.u32 4294901760, %v1186_v10 }
 0x11b   :  { %1155 = vmatpush.msra.mxu1 %v2265_v19  ;;  %v1184_v19 = vld [vmem:[#allocation8 + $0x50] sm:$0xff]  ;;  %1194 = vmatpush.msra.mxu2 %v2384_v44 }
 0x11d   :  { %1157 = vmatpush.msra.mxu1 %v2280_v28  ;;  %v2393_v28 = vsub.f32 %v1189_v48, %v2382_v31  ;;  %1196 = vmatpush.msra.mxu2 %v2386_v9  ;;  %v1176_v48 = vld [vmem:[#allocation8 + $0x10] sm:$0xff] }
 0x11f   :  { %1159 = vmatpush.msra.mxu1 %v2293_v46  ;;  %v2403_v46 = vsub.f32 %v1186_v10, %v2388_v16  ;;  %v1234_v63 = vand.u32 4294901760, %v2393_v28  ;;  %1198 = vmatpush.msra.mxu2 %v2388_v16 }
 0x121   :  { %1161 = vmatpush.msra.mxu1 %v2300_v56  ;;  %v2408_v56 = vand.u32 4294901760, %v1184_v19  ;;  %v1252_v39 = vand.u32 4294901760, %v2403_v46  ;;  %v1235_v3 = vsub.f32 %v2393_v28, %v1234_v63  ;;  %1200 = vmatpush.msra.mxu2 %v2390_v17 }
 0x123   :  { %1163 = vmatpush.msra.mxu1 %v2314_v18  ;;  %v1246_v18 = vand.u32 4294901760, %v2399_v45  ;;  %v2421_v47 = vsub.f32 %v1184_v19, %v2408_v56  ;;  %v1236_v38 = vand.u32 4294901760, %v1235_v3  ;;  %1202 = vmatpush.msra.mxu2 %v2408_v56 }
 0x125   :  { %1165 = vmatpush.msra.mxu1 %v2324_v8  ;;  %v1247_v5 = vsub.f32 %v2399_v45, %v1246_v18  ;;  %v1264_v20 = vand.u32 4294901760, %v2421_v47  ;;  %1237 = vmatpush.msra.mxu3 %v1236_v38 }
 0x126   :  { %1204 = vmatpush.msra.mxu2 %v2410_v58 }
 0x127   :  { %1167 = vmatpush.msra.mxu1 %v2333_v15  ;;  %v1253_v15 = vsub.f32 %v2403_v46, %v1252_v39  ;;  %v1248_v57 = vand.u32 4294901760, %v1247_v5  ;;  %1243 = vmatpush.msra.mxu3 %v1242_v40 }
 0x129   :  { %1249 = vmatpush.msra.mxu3 %v1248_v57 }
 0x165   :  { %v652_v34 = vpop.f32.mrf.mxu0 }
 0x167   :  { %v691_v62 = vpop.f32.mrf.mxu1 }
 0x169   :  { %v598_v24 = vpop.f32.mrf.mxu3 }
 0x171   :  { %v497_v25 = vpop.f32.mrf.mxu2  ;;  %v797_v12 = vpop.f32.mrf.mxu3 }
 0x172   :  { %v498_v29 = vadd.f32 1e-05, %v497_v25  ;;  %v2449_v25 = vand.u32 4294901760, %v1181_v22 }
 0x174   :  { %v599_v33 = vadd.f32 %v598_v24, %v498_v29  ;;  %v2446_v24 = vand.u32 4294901760, %v1182_v21  ;;  %v2451_v29 = vand.u32 4294901760, %v1180_v37 }
 0x176   :  { %v653_v35 = vadd.f32 %v652_v34, %v599_v33  ;;  %v1254_v34 = vand.u32 4294901760, %v1253_v15  ;;  %1206 = vmatpush.msra.mxu2 %v2446_v24  ;;  %v2504_v15 = vand.u32 4294901760, %v1175_v23 }
 0x178   :  { %v692_v0 = vadd.f32 %v691_v62, %v653_v35  ;;  %v1265_v35 = vsub.f32 %v2421_v47, %v1264_v20  ;;  %v2456_v62 = vand.u32 4294901760, %v1179_v41  ;;  %1255 = vmatpush.msra.mxu3 %v1254_v34  ;;  %1208 = vmatpush.msra.mxu2 %v2449_v25  ;;  %v2522_v57 = vsub.f32 %v1175_v23, %v2504_v15 }
 0x179   :  { %v760_v2 = vpop.f32.mrf.mxu2 }
 0x17a   :  { %v761_v7 = vadd.f32 %v760_v2, %v692_v0  ;;  %v1177_v0 = vld [vmem:[#allocation8 + $0x18] sm:$0xff]  ;;  %v2459_v2 = vsub.f32 %v1182_v21, %v2446_v24  ;;  %v1266_v19 = vand.u32 4294901760, %v1265_v35  ;;  %1210 = vmatpush.msra.mxu2 %v2451_v29 }
 0x17b   :  { %v2481_v10 = vand.u32 4294901760, %v1177_v0 }
 0x17c   :  { %v798_v13 = vadd.f32 %v797_v12, %v761_v7  ;;  %v2462_v7 = vsub.f32 %v1181_v22, %v2449_v25  ;;  %v2466_v12 = vsub.f32 %v1180_v37, %v2451_v29  ;;  %v1276_v53 = vand.u32 4294901760, %v2459_v2  ;;  %1212 = vmatpush.msra.mxu2 %v2456_v62 }
 0x17e   :  { %1565 = vrsqrt.f32 %v798_v13  ;;  %vm806_vm0 = vweird.f32 %v798_v13  ;;  %v1282_v61 = vand.u32 4294901760, %v2462_v7 }
 0x180   :  { %v1283_v4 = vsub.f32 %v2462_v7, %v1282_v61 }
 0x184   :  { %v1566_v30 = vpop.eup %1565 }
 0x185   :  { %v801_v32 = vmul.f32 %v1566_v30, %v798_v13  ;;  %vm807_vm1 = vweird.f32 %v1566_v30  ;;  %v2468_v13 = vand.u32 4294901760, %v1178_v52 }
 0x186   :  { %vm808_vm2 = vmor %vm806_vm0, %vm807_vm1 }
 0x187   :  { %v802_v36 = vmul.f32 %v1566_v30, %v801_v32  ;;  %v1260_v32 = vand.u32 4294901760, %v1259_v51  ;;  %1214 = vmatpush.msra.mxu2 %v2468_v13 }
 0x189   :  { %v803_v55 = vmul.f32 0.5, %v802_v36  ;;  %1261 = vmatpush.msra.mxu3 %v1260_v32  ;;  %1216 = vmatpush.msra.mxu2 %v2481_v10 }
 0x18b   :  { %v804_v27 = vsub.f32 1.5, %v803_v55  ;;  %v2479_v55 = vsub.f32 %v1179_v41, %v2456_v62  ;;  %1267 = vmatpush.msra.mxu3 %v1266_v19 }
 0x18d   :  { %v805_v59 = vmul.f32 %v1566_v30, %v804_v27  ;;  %v1277_v27 = vsub.f32 %v2459_v2, %v1276_v53  ;;  %v1294_v5 = vand.u32 4294901760, %v2479_v55 }
 0x18f   :  { %v809_v8 = vsel %vm808_vm2, %v1566_v30, %v805_v59  ;;  %v1288_v59 = vand.u32 4294901760, %v2466_v12  ;;  %v1278_v22 = vand.u32 4294901760, %v1277_v27  ;;  %v1295_v51 = vsub.f32 %v2479_v55, %v1294_v5 }
 0x190   :  { %v810_v14 = vmul.f32 %v809_v8, %v2188_v50  ;;  %v1270_v50 = vand.u32 4294901760, %v2424_v60  ;;  %v2493_v8 = vand.u32 4294901760, %v1176_v48 }
 0x191   :  { %v1289_v37 = vsub.f32 %v2466_v12, %v1288_v59 }
 0x192   :  { %v812_v49 = vmul.f32 %v1561_v26, %v810_v14  ;;  %v1271_v36 = vsub.f32 %v2424_v60, %v1270_v50  ;;  %v2491_v26 = vsub.f32 %v1178_v52, %v2468_v13  ;;  %v2502_v14 = vsub.f32 %v1177_v0, %v2481_v10  ;;  %1218 = vmatpush.msra.mxu2 %v2493_v8 }
 0x193   :  { %v2513_v40 = vsub.f32 %v1176_v48, %v2493_v8  ;;  %v1296_v0 = vand.u32 4294901760, %v1295_v51 }
 0x194   :  { %v814_v33 = vadd.f32 %v1562_v1, %v812_v49  ;;  %v1272_v3 = vand.u32 4294901760, %v1271_v36  ;;  %v1300_v38 = vand.u32 4294901760, %v2491_v26  ;;  %v1284_v49 = vand.u32 4294901760, %v1283_v4  ;;  %1220 = vmatpush.msra.mxu2 %v2504_v15 }
 0x195   :  { %v1306_v52 = vand.u32 4294901760, %v2502_v14  ;;  %v1312_v35 = vand.u32 4294901760, %v2513_v40  ;;  %v1318_v36 = vand.u32 4294901760, %v2522_v57 }
 0x196   :  { %v2470_v30 = vand.u32 4294901760, %v814_v33  ;;  %1273 = vmatpush.msra.mxu3 %v1272_v3  ;;  %v1301_v34 = vsub.f32 %v2491_v26, %v1300_v38 }
 0x197   :  { %v1307_v32 = vsub.f32 %v2502_v14, %v1306_v52  ;;  %v1319_v23 = vsub.f32 %v2522_v57, %v1318_v36 }
 0x198   :  { %970 = vmatmul.f32.vlgmr.msrb.gmra.mxu1 %v2470_v30  ;;  %v865_v11 = vsub.f32 %v814_v33, %v2470_v30  ;;  %1279 = vmatpush.msra.mxu3 %v1278_v22  ;;  %v1290_v33 = vand.u32 4294901760, %v1289_v37  ;;  %v1302_v48 = vand.u32 4294901760, %v1301_v34 }
 0x199   :  { %1388 = vmatpush.msrb.mxu1 %v2382_v31  ;;  %v1308_v19 = vand.u32 4294901760, %v1307_v32 }
 0x19a   :  { %1024 = vmatmul.f32.vlgmr.msrb.gmra.mxu2 %v865_v11  ;;  %v866_v1 = vand.u32 4294901760, %v865_v11  ;;  %1285 = vmatpush.msra.mxu3 %v1284_v49 }
 0x19b   :  { %1390 = vmatpush.msrb.mxu1 %v2384_v44 }
 0x19c   :  { %1063 = vmatmul.f32.vlgmr.msrb.gmra.mxu3 %v866_v1  ;;  %v867_v21 = vsub.f32 %v865_v11, %v866_v1  ;;  %v1313_v11 = vsub.f32 %v2513_v40, %v1312_v35  ;;  %v1320_v1 = vand.u32 4294901760, %v1319_v23 }
 0x19d   :  { %1392 = vmatpush.msrb.mxu1 %v2386_v9  ;;  %1291 = vmatpush.msra.mxu3 %v1290_v33 }
 0x19e   :  { %v868_v41 = vand.u32 4294901760, %v867_v21  ;;  %v1314_v27 = vand.u32 4294901760, %v1313_v11 }
 0x19f   :  { %1394 = vmatpush.msrb.mxu1 %v2388_v16  ;;  %1297 = vmatpush.msra.mxu3 %v1296_v0 }
 0x1a0   :  { %869 = vmatmul.f32.vlgmr.msrb.gmra.mxu0 %v868_v41  ;;  %1169 = vmatmul.f32.vlgmr.msra.gmra.mxu1 %v2470_v30 }
 0x1a1   :  { %1335 = vmatpush.msrb.mxu0 %v2393_v28  ;;  %1396 = vmatpush.msrb.mxu1 %v2390_v17 }
 0x1a2   :  { %1303 = vmatpush.msra.mxu3 %v1302_v48 }
 0x1a3   :  { %1338 = vmatpush.msrb.mxu0 %v2396_v43  ;;  %1398 = vmatpush.msrb.mxu1 %v2408_v56 }
 0x1a4   :  { %1309 = vmatpush.msra.mxu3 %v1308_v19 }
 0x1a5   :  { %1341 = vmatpush.msrb.mxu0 %v2399_v45  ;;  %1400 = vmatpush.msrb.mxu1 %v2410_v58 }
 0x1a6   :  { %1315 = vmatpush.msra.mxu3 %v1314_v27 }
 0x1a7   :  { %1344 = vmatpush.msrb.mxu0 %v2403_v46  ;;  %1402 = vmatpush.msrb.mxu1 %v2446_v24 }
 0x1a8   :  { %1132 = vmatmul.f32.vlgmr.msra.gmra.mxu0 %v2470_v30  ;;  %1321 = vmatpush.msra.mxu3 %v1320_v1  ;;  %v1174_v30 = vld [vmem:[#allocation8] sm:$0xff] }
 0x1a9   :  { %1347 = vmatpush.msrb.mxu0 %v2406_v54  ;;  %1404 = vmatpush.msrb.mxu1 %v2449_v25  ;;  %v1221_v3 = vand.u32 4294901760, %v1174_v30 }
 0x1ab   :  { %1350 = vmatpush.msrb.mxu0 %v2421_v47  ;;  %1406 = vmatpush.msrb.mxu1 %v2451_v29  ;;  %v1323_v4 = vsub.f32 %v1174_v30, %v1221_v3 }
 0x1ac   :  { %1222 = vmatpush.msra.mxu2 %v1221_v3 }
 0x1ad   :  { %1353 = vmatpush.msrb.mxu0 %v2424_v60  ;;  %1408 = vmatpush.msrb.mxu1 %v2456_v62  ;;  %v1324_v21 = vand.u32 4294901760, %v1323_v4 }
 0x1ae   :  { %1429 = vmatpush.msrb.mxu2 %v1234_v63 }
 0x1af   :  { %1356 = vmatpush.msrb.mxu0 %v2459_v2  ;;  %1410 = vmatpush.msrb.mxu1 %v2468_v13  ;;  %v1325_v22 = vsub.f32 %v1323_v4, %v1324_v21 }
 0x1b0   :  { %1433 = vmatpush.msrb.mxu2 %v1240_v6 }
 0x1b1   :  { %1359 = vmatpush.msrb.mxu0 %v2462_v7  ;;  %1412 = vmatpush.msrb.mxu1 %v2481_v10  ;;  %v1326_v37 = vand.u32 4294901760, %v1325_v22 }
 0x1b2   :  { %1437 = vmatpush.msrb.mxu2 %v1246_v18 }
 0x1b3   :  { %1362 = vmatpush.msrb.mxu0 %v2466_v12  ;;  %1414 = vmatpush.msrb.mxu1 %v2493_v8 }
 0x1b4   :  { %1441 = vmatpush.msrb.mxu2 %v1252_v39  ;;  %1327 = vmatpush.msra.mxu3 %v1326_v37 }
 0x1b5   :  { %1365 = vmatpush.msrb.mxu0 %v2479_v55  ;;  %1416 = vmatpush.msrb.mxu1 %v2504_v15 }
 0x1b6   :  { %1496 = vmatpush.msrb.mxu3 %v2382_v31  ;;  %1445 = vmatpush.msrb.mxu2 %v1258_v42  ;;  %v1563_v31 = vld [vmem:[#allocation5 + $0x2] ss:$0 sm:$0xff] }
 0x1b7   :  { %1368 = vmatpush.msrb.mxu0 %v2491_v26  ;;  %1418 = vmatpush.msrb.mxu1 %v1221_v3 }
 0x1b8   :  { %1498 = vmatpush.msrb.mxu3 %v2384_v44  ;;  %1449 = vmatpush.msrb.mxu2 %v1264_v20  ;;  %v1564_v20 = vld [vmem:[#allocation5 + $0x3] ss:$0 sm:$0xff] }
 0x1b9   :  { %1371 = vmatpush.msrb.mxu0 %v2502_v14 }
 0x1ba   :  { %1500 = vmatpush.msrb.mxu3 %v2386_v9  ;;  %1453 = vmatpush.msrb.mxu2 %v1270_v50 }
 0x1bb   :  { %1374 = vmatpush.msrb.mxu0 %v2513_v40 }
 0x1bc   :  { %1502 = vmatpush.msrb.mxu3 %v2388_v16  ;;  %1457 = vmatpush.msrb.mxu2 %v1276_v53 }
 0x1bd   :  { %1377 = vmatpush.msrb.mxu0 %v2522_v57 }
 0x1be   :  { %1504 = vmatpush.msrb.mxu3 %v2390_v17  ;;  %1461 = vmatpush.msrb.mxu2 %v1282_v61 }
 0x1bf   :  { %1380 = vmatpush.msrb.mxu0 %v1323_v4 }
 0x1c0   :  { %1506 = vmatpush.msrb.mxu3 %v2408_v56  ;;  %1465 = vmatpush.msrb.mxu2 %v1288_v59 }
 0x1c2   :  { %1508 = vmatpush.msrb.mxu3 %v2410_v58  ;;  %1469 = vmatpush.msrb.mxu2 %v1294_v5 }
 0x1c4   :  { %1510 = vmatpush.msrb.mxu3 %v2446_v24  ;;  %1473 = vmatpush.msrb.mxu2 %v1300_v38 }
 0x1c6   :  { %1512 = vmatpush.msrb.mxu3 %v2449_v25  ;;  %1477 = vmatpush.msrb.mxu2 %v1306_v52 }
 0x1c8   :  { %1514 = vmatpush.msrb.mxu3 %v2451_v29  ;;  %1481 = vmatpush.msrb.mxu2 %v1312_v35 }
 0x1ca   :  { %1516 = vmatpush.msrb.mxu3 %v2456_v62  ;;  %1485 = vmatpush.msrb.mxu2 %v1318_v36 }
 0x1cc   :  { %1518 = vmatpush.msrb.mxu3 %v2468_v13  ;;  %1489 = vmatpush.msrb.mxu2 %v1324_v21 }
 0x1ce   :  { %1520 = vmatpush.msrb.mxu3 %v2481_v10  ;;  %v1567_v10 = vld [vmem:[#allocation2] sm:$0xff] }
 0x1d0   :  { %1522 = vmatpush.msrb.mxu3 %v2493_v8 }
 0x1d2   :  { %1524 = vmatpush.msrb.mxu3 %v2504_v15 }
 0x1d4   :  { %1526 = vmatpush.msrb.mxu3 %v1221_v3 }
 0x215   :  { %v971_v44 = vpop.f32.mrf.mxu1 }
 0x21d   :  { %v870_v9 = vpop.f32.mrf.mxu0  ;;  %v1025_v28 = vpop.f32.mrf.mxu2 }
 0x21e   :  { %v871_v16 = vadd.f32 %v1563_v31, %v870_v9  ;;  %v1170_v58 = vpop.f32.mrf.mxu1 }
 0x21f   :  { %v1064_v45 = vpop.f32.mrf.mxu3 }
 0x220   :  { %v972_v17 = vadd.f32 %v971_v44, %v871_v16 }
 0x222   :  { %v1026_v43 = vadd.f32 %v1025_v28, %v972_v17 }
 0x224   :  { %v1065_v46 = vadd.f32 %v1064_v45, %v1026_v43 }
 0x225   :  { %v1133_v54 = vpop.f32.mrf.mxu0 }
 0x226   :  { %v1134_v56 = vadd.f32 %v1133_v54, %v1065_v46 }
 0x228   :  { %v1171_v63 = vadd.f32 %v1170_v58, %v1134_v56 }
 0x22a   :  { %v1173_v6 = vmax.f32 %v1171_v63, 0.0 }
 0x22c   :  { %v1223_v18 = vand.u32 4294901760, %v1173_v6 }
 0x22e   :  { %v1224_v39 = vsub.f32 %v1173_v6, %v1223_v18  ;;  %1329 = vmatmul.f32.vlgmr.msra.gmra.mxu3 %v1223_v18 }
 0x230   :  { %1383 = vmatmul.f32.vlgmr.msrb.gmra.mxu0 %v1224_v39  ;;  %v1225_v42 = vand.u32 4294901760, %v1224_v39 }
 0x232   :  { %1422 = vmatmul.f32.vlgmr.msrb.gmra.mxu1 %v1225_v42  ;;  %v1226_v47 = vsub.f32 %v1224_v39, %v1225_v42 }
 0x234   :  { %v1227_v60 = vand.u32 4294901760, %v1226_v47 }
 0x236   :  { %1228 = vmatmul.f32.vlgmr.msra.gmra.mxu2 %v1227_v60  ;;  %1528 = vmatmul.f32.vlgmr.msrb.gmra.mxu3 %v1223_v18 }
 0x23e   :  { %1491 = vmatmul.f32.vlgmr.msrb.gmra.mxu2 %v1223_v18 }
 0x2ad   :  { %v1384_v62 = vpop.f32.mrf.mxu0 }
 0x2af   :  { %v1423_v7 = vpop.f32.mrf.mxu1 }
 0x2b1   :  { %v1330_v50 = vpop.f32.mrf.mxu3 }
 0x2b9   :  { %v1229_v24 = vpop.f32.mrf.mxu2  ;;  %v1529_v61 = vpop.f32.mrf.mxu3 }
 0x2ba   :  { %v1230_v25 = vadd.f32 %v1564_v20, %v1229_v24 }
 0x2bc   :  { %v1331_v29 = vadd.f32 %v1330_v50, %v1230_v25 }
 0x2be   :  { %v1385_v2 = vadd.f32 %v1384_v62, %v1331_v29 }
 0x2c0   :  { %v1424_v12 = vadd.f32 %v1423_v7, %v1385_v2 }
 0x2c1   :  { %v1492_v13 = vpop.f32.mrf.mxu2 }
 0x2c2   :  { %v1493_v53 = vadd.f32 %v1492_v13, %v1424_v12 }
 0x2c4   :  { %v1530_v55 = vadd.f32 %v1529_v61, %v1493_v53 }
 0x2c6   :  { %v1532_v59 = vadd.f32 %v1567_v10, %v1530_v55 }
 0x2c8   :  { %1533 = vst [vmem:[#allocation11] sm:$0xff] %v1532_v59 }
 0x2c9   :  { %1544 = dma.vmem_to_hbm [thread:$0]  %s1540_s4, 128, %s1542_s19, [#allocation4]  }
 0x2ca   :  { %1718 = dma.done.wait [#allocation4], 128  }
 0x2cb   :  { %1719 = vsyncadd [#allocation4], 4294967168 }
 0x2cc   :  { %1549 = vsyncpa [#allocation3], 1 }
 0x2cd   :  { %1550 = vsyncpa [#allocation6], 1 }
 0x2ce   :  { %1551 = vsyncpa [#allocation9], 1 }
 0x2cf   :  { %1552 = vsyncpa [#allocation4], 1 }

</bundles_post_ra>
